<compile_context>
chip_gen: v7x
topology: tpu7x:2x2x1
jax: 0.10.0
libtpu: 0.0.40
codegen_flags: <defaults>
</compile_context>

<pallas_src>
import jax
import jax.numpy as jnp
from jax import lax
from jax.experimental import pallas as pl
from jax.experimental.pallas import tpu as pltpu

# ----- model dims (from the PyTorch module) -----
NUM_CATEGORIES = 50
CAT_EMB_SIZE = 8
NUM_CAT_FIELDS = 8          # categorical_input.size(1)
CONTINUOUS_SIZE = 5
HIDDEN_SIZE = 64
SEQ_HIDDEN_SIZE = 32
SEQ_LEN = 5
SEQ_FEAT = 7

EMB_FEAT = CAT_EMB_SIZE * NUM_CAT_FIELDS                 # 64
COMB_IN = EMB_FEAT + HIDDEN_SIZE + SEQ_HIDDEN_SIZE       # 160
FIELD_PAD = 64                                           # per-field one-hot width (lane aligned)
ONEHOT_W = NUM_CAT_FIELDS * FIELD_PAD                    # 512

# TODO(synk): the original PyTorch module declares combined_layer with
# in_features = cat_emb*8 + hidden (=128) but its forward concatenates 160
# features (it also appends the 32-dim LSTM output); implemented here with
# in_features = 160 so the forward pass is actually runnable.


def simple_nn_kernel(cat_ref, cont_ref, seq_ref,
                     w_emb_ref,
                     w_cont_ref, b_cont_ref,
                     w_ih_ref, b_lstm_ref, w_hh_ref,
                     w_comb_ref, b_comb_ref,
                     w_hid_ref, b_hid_ref,
                     w_out_ref, b_out_ref,
                     out_ref):
    f32 = jnp.float32
    B = cont_ref.shape[0]
    H = SEQ_HIDDEN_SIZE

    # ---- embedding lookup fused in-kernel (one-hot @ block-diag emb weight) ----
    cat = cat_ref[...]                                            # (B, 8) int32
    lane_iota = lax.broadcasted_iota(jnp.int32, (B, FIELD_PAD), 1)
    onehot = jnp.concatenate(
        [(lane_iota == cat[:, f:f + 1]).astype(f32)
         for f in range(NUM_CAT_FIELDS)], axis=1)                 # (B, 512)
    embedded = jnp.dot(onehot, w_emb_ref[...],
                       preferred_element_type=f32)                # (B, 64)

    # ---- continuous branch: relu(x @ W + b) ----
    cont_out = jnp.maximum(
        jnp.dot(cont_ref[...], w_cont_ref[...], preferred_element_type=f32)
        + b_cont_ref[...], 0.0)                                   # (B, 64)

    # ---- LSTM: input projection hoisted out of the recurrence ----
    # seq_ref is (T*B, F) time-major; b_lstm = b_ih + b_hh added once here.
    xg_all = (jnp.dot(seq_ref[...], w_ih_ref[...], preferred_element_type=f32)
              + b_lstm_ref[...])                                  # (T*B, 4H)

    lane128 = lax.broadcasted_iota(jnp.int32, (B, 4 * H), 1)
    sig_mask = (lane128 < 2 * H) | (lane128 >= 3 * H)             # i,f,o -> sigmoid; g -> tanh

    h = jnp.zeros((B, H), f32)
    c = jnp.zeros((B, H), f32)
    for t in range(SEQ_LEN):                                      # static unroll (T = 5)
        gates = xg_all[t * B:(t + 1) * B, :] + jnp.dot(
            h, w_hh_ref[...], preferred_element_type=f32)         # (B, 4H)
        # one full-vreg tanh; sigmoid(x) == 0.5 * (1 + tanh(x / 2))
        tz = jnp.tanh(jnp.where(sig_mask, gates * 0.5, gates))
        act = jnp.where(sig_mask, 0.5 * tz + 0.5, tz)
        i_g = act[:, 0:H]
        f_g = act[:, H:2 * H]
        g_g = act[:, 2 * H:3 * H]
        o_g = act[:, 3 * H:4 * H]
        c = f_g * c + i_g * g_g
        h = o_g * jnp.tanh(c)
    seq_out = h                                                   # (B, 32)

    # ---- combined layer: single K=160 matmul on the concatenated features ----
    comb_in = jnp.concatenate([embedded, cont_out, seq_out], axis=1)   # (B, 160)
    comb_out = jnp.maximum(
        jnp.dot(comb_in, w_comb_ref[...], preferred_element_type=f32)
        + b_comb_ref[...], 0.0)

    hid_out = jnp.maximum(
        jnp.dot(comb_out, w_hid_ref[...], preferred_element_type=f32)
        + b_hid_ref[...], 0.0)

    # ---- output head: VPU multiply + lane reduction (no 1-column MXU pass) ----
    out_ref[...] = (jnp.sum(hid_out * w_out_ref[...], axis=-1, keepdims=True)
                    + b_out_ref[...])


def init_params(key):
    """Deterministic parameter init. Weights stored pre-transposed as (in, out)."""
    ks = jax.random.split(key, 12)

    def w(k, shape, fan_in):
        return jax.random.normal(k, shape, jnp.float32) / jnp.sqrt(float(fan_in))

    feat_e = EMB_FEAT
    return {
        "emb_table": w(ks[0], (NUM_CATEGORIES, CAT_EMB_SIZE), 1),
        "w_cont": w(ks[1], (CONTINUOUS_SIZE, HIDDEN_SIZE), CONTINUOUS_SIZE),
        "b_cont": w(ks[2], (1, HIDDEN_SIZE), CONTINUOUS_SIZE),
        "w_ih": w(ks[3], (SEQ_FEAT, 4 * SEQ_HIDDEN_SIZE), SEQ_HIDDEN_SIZE),
        "b_ih": w(ks[4], (1, 4 * SEQ_HIDDEN_SIZE), SEQ_HIDDEN_SIZE),
        "w_hh": w(ks[5], (SEQ_HIDDEN_SIZE, 4 * SEQ_HIDDEN_SIZE), SEQ_HIDDEN_SIZE),
        "b_hh": w(ks[6], (1, 4 * SEQ_HIDDEN_SIZE), SEQ_HIDDEN_SIZE),
        # combined_layer weight split into emb / continuous / sequence blocks
        "w_comb_e": w(ks[7], (feat_e, HIDDEN_SIZE), COMB_IN),
        "w_comb_c": w(ks[8], (HIDDEN_SIZE, HIDDEN_SIZE), COMB_IN),
        "w_comb_s": w(ks[9], (SEQ_HIDDEN_SIZE, HIDDEN_SIZE), COMB_IN),
        "b_comb": jnp.zeros((1, HIDDEN_SIZE), jnp.float32),
        "w_hid": w(ks[10], (HIDDEN_SIZE, HIDDEN_SIZE), HIDDEN_SIZE),
        "b_hid": jnp.zeros((1, HIDDEN_SIZE), jnp.float32),
        "w_out": w(ks[11], (HIDDEN_SIZE, 1), HIDDEN_SIZE),
        "b_out": jnp.zeros((1, 1), jnp.float32),
    }


def prepare_kernel_params(p):
    """One-time (outside the forward) repack into the kernel-ready layout."""
    # Block-diagonal embedding weight so the gather becomes one one-hot matmul.
    w_emb = jnp.zeros((ONEHOT_W, EMB_FEAT), jnp.float32)
    for f in range(NUM_CAT_FIELDS):
        w_emb = w_emb.at[f * FIELD_PAD:f * FIELD_PAD + NUM_CATEGORIES,
                         f * CAT_EMB_SIZE:(f + 1) * CAT_EMB_SIZE].set(p["emb_table"])
    return {
        "w_emb": w_emb,
        "w_cont": p["w_cont"], "b_cont": p["b_cont"],
        "w_ih": p["w_ih"],
        "b_lstm": p["b_ih"] + p["b_hh"],          # merged LSTM bias
        "w_hh": p["w_hh"],
        "w_comb": jnp.concatenate(
            [p["w_comb_e"], p["w_comb_c"], p["w_comb_s"]], axis=0),   # (160, 64)
        "b_comb": p["b_comb"],
        "w_hid": p["w_hid"], "b_hid": p["b_hid"],
        "w_out_row": p["w_out"].T,                # (1, 64) for VPU reduce
        "b_out": p["b_out"],
    }


def simple_nn_forward(kp, categorical, continuous, sequence):
    B = categorical.shape[0]
    # time-major flatten: each timestep is a contiguous, sublane-aligned row block
    seq_flat = jnp.transpose(sequence, (1, 0, 2)).reshape(SEQ_LEN * B, SEQ_FEAT)

    args = (categorical.astype(jnp.int32),
            continuous.astype(jnp.float32),
            seq_flat.astype(jnp.float32),
            kp["w_emb"],
            kp["w_cont"], kp["b_cont"],
            kp["w_ih"], kp["b_lstm"], kp["w_hh"],
            kp["w_comb"], kp["b_comb"],
            kp["w_hid"], kp["b_hid"],
            kp["w_out_row"], kp["b_out"])

    return pl.pallas_call(
        simple_nn_kernel,
        out_shape=jax.ShapeDtypeStruct((B, 1), jnp.float32),
        in_specs=[pl.BlockSpec(memory_space=pltpu.MemorySpace.VMEM)] * len(args),
        out_specs=pl.BlockSpec(memory_space=pltpu.MemorySpace.VMEM),
    )(*args)


def simple_nn_reference(params, categorical, continuous, sequence):
    """Pure-JAX reference (PyTorch gate order i,f,g,o) for a sanity check."""
    B = categorical.shape[0]
    emb = params["emb_table"][categorical].reshape(B, -1)
    cont = jnp.maximum(continuous @ params["w_cont"] + params["b_cont"], 0.0)
    H = SEQ_HIDDEN_SIZE
    h = jnp.zeros((B, H), jnp.float32)
    c = jnp.zeros((B, H), jnp.float32)
    for t in range(SEQ_LEN):
        g = (sequence[:, t, :] @ params["w_ih"] + params["b_ih"]
             + h @ params["w_hh"] + params["b_hh"])
        i_g = jax.nn.sigmoid(g[:, :H]); f_g = jax.nn.sigmoid(g[:, H:2 * H])
        g_g = jnp.tanh(g[:, 2 * H:3 * H]); o_g = jax.nn.sigmoid(g[:, 3 * H:])
        c = f_g * c + i_g * g_g
        h = o_g * jnp.tanh(c)
    w_comb = jnp.concatenate(
        [params["w_comb_e"], params["w_comb_c"], params["w_comb_s"]], axis=0)
    comb = jnp.maximum(
        jnp.concatenate([emb, cont, h], axis=1) @ w_comb + params["b_comb"], 0.0)
    hid = jnp.maximum(comb @ params["w_hid"] + params["b_hid"], 0.0)
    return hid @ params["w_out"] + params["b_out"]


if __name__ == "__main__":
    key = jax.random.PRNGKey(0)
    k_param, k_cat, k_cont, k_seq = jax.random.split(key, 4)

    B = 8  # small batch
    params = init_params(k_param)
    kernel_params = prepare_kernel_params(params)

    categorical = jax.random.randint(k_cat, (B, NUM_CAT_FIELDS), 0, NUM_CATEGORIES)
    continuous = jax.random.normal(k_cont, (B, CONTINUOUS_SIZE), jnp.float32)
    sequence = jax.random.normal(k_seq, (B, SEQ_LEN, SEQ_FEAT), jnp.float32)

    out = simple_nn_forward(kernel_params, categorical, continuous, sequence)
    out = jax.block_until_ready(out)
    assert out.shape == (B, 1), out.shape

    ref = simple_nn_reference(params, categorical, continuous, sequence)
    assert jnp.allclose(out, ref, atol=2e-2, rtol=2e-2), (out, ref)

    print("KERNEL_OK")
</pallas_src>

<mosaic_0001>
module attributes {stable_mosaic.version = 11 : i64} {
  func.func @simple_nn_kernel(%arg0: memref<8x8xi32, #tpu.memory_space<vmem>>, %arg1: memref<8x5xf32, #tpu.memory_space<vmem>>, %arg2: memref<40x7xf32, #tpu.memory_space<vmem>>, %arg3: memref<512x64xf32, #tpu.memory_space<vmem>>, %arg4: memref<5x64xf32, #tpu.memory_space<vmem>>, %arg5: memref<1x64xf32, #tpu.memory_space<vmem>>, %arg6: memref<7x128xf32, #tpu.memory_space<vmem>>, %arg7: memref<1x128xf32, #tpu.memory_space<vmem>>, %arg8: memref<32x128xf32, #tpu.memory_space<vmem>>, %arg9: memref<160x64xf32, #tpu.memory_space<vmem>>, %arg10: memref<1x64xf32, #tpu.memory_space<vmem>>, %arg11: memref<64x64xf32, #tpu.memory_space<vmem>>, %arg12: memref<1x64xf32, #tpu.memory_space<vmem>>, %arg13: memref<1x64xf32, #tpu.memory_space<vmem>>, %arg14: memref<1x1xf32, #tpu.memory_space<vmem>>, %arg15: memref<8x1xf32, #tpu.memory_space<vmem>>) attributes {dimension_semantics = [], scalar_prefetch = 0 : i64, scratch_operands = 0 : i64, tpu.core_type = #tpu.core_type<tc>} {
    %c0 = arith.constant 0 : index
    %c0_0 = arith.constant 0 : index
    %0 = vector.load %arg0[%c0, %c0_0] : memref<8x8xi32, #tpu.memory_space<vmem>>, vector<8x8xi32>
    %1 = tpu.iota {dimensions = array<i32: 1>} : vector<8x64xi32>
    %2 = vector.extract_strided_slice %0 {offsets = [0, 0], sizes = [8, 1], strides = [1, 1]} : vector<8x8xi32> to vector<8x1xi32>
    %3 = vector.broadcast %2 : vector<8x1xi32> to vector<8x64xi32>
    %4 = arith.cmpi eq, %1, %3 : vector<8x64xi32>
    %5 = arith.extui %4 : vector<8x64xi1> to vector<8x64xi32>
    %6 = arith.sitofp %5 : vector<8x64xi32> to vector<8x64xf32>
    %7 = vector.extract_strided_slice %0 {offsets = [0, 1], sizes = [8, 1], strides = [1, 1]} : vector<8x8xi32> to vector<8x1xi32>
    %8 = vector.broadcast %7 : vector<8x1xi32> to vector<8x64xi32>
    %9 = arith.cmpi eq, %1, %8 : vector<8x64xi32>
    %10 = arith.extui %9 : vector<8x64xi1> to vector<8x64xi32>
    %11 = arith.sitofp %10 : vector<8x64xi32> to vector<8x64xf32>
    %12 = vector.extract_strided_slice %0 {offsets = [0, 2], sizes = [8, 1], strides = [1, 1]} : vector<8x8xi32> to vector<8x1xi32>
    %13 = vector.broadcast %12 : vector<8x1xi32> to vector<8x64xi32>
    %14 = arith.cmpi eq, %1, %13 : vector<8x64xi32>
    %15 = arith.extui %14 : vector<8x64xi1> to vector<8x64xi32>
    %16 = arith.sitofp %15 : vector<8x64xi32> to vector<8x64xf32>
    %17 = vector.extract_strided_slice %0 {offsets = [0, 3], sizes = [8, 1], strides = [1, 1]} : vector<8x8xi32> to vector<8x1xi32>
    %18 = vector.broadcast %17 : vector<8x1xi32> to vector<8x64xi32>
    %19 = arith.cmpi eq, %1, %18 : vector<8x64xi32>
    %20 = arith.extui %19 : vector<8x64xi1> to vector<8x64xi32>
    %21 = arith.sitofp %20 : vector<8x64xi32> to vector<8x64xf32>
    %22 = vector.extract_strided_slice %0 {offsets = [0, 4], sizes = [8, 1], strides = [1, 1]} : vector<8x8xi32> to vector<8x1xi32>
    %23 = vector.broadcast %22 : vector<8x1xi32> to vector<8x64xi32>
    %24 = arith.cmpi eq, %1, %23 : vector<8x64xi32>
    %25 = arith.extui %24 : vector<8x64xi1> to vector<8x64xi32>
    %26 = arith.sitofp %25 : vector<8x64xi32> to vector<8x64xf32>
    %27 = vector.extract_strided_slice %0 {offsets = [0, 5], sizes = [8, 1], strides = [1, 1]} : vector<8x8xi32> to vector<8x1xi32>
    %28 = vector.broadcast %27 : vector<8x1xi32> to vector<8x64xi32>
    %29 = arith.cmpi eq, %1, %28 : vector<8x64xi32>
    %30 = arith.extui %29 : vector<8x64xi1> to vector<8x64xi32>
    %31 = arith.sitofp %30 : vector<8x64xi32> to vector<8x64xf32>
    %32 = vector.extract_strided_slice %0 {offsets = [0, 6], sizes = [8, 1], strides = [1, 1]} : vector<8x8xi32> to vector<8x1xi32>
    %33 = vector.broadcast %32 : vector<8x1xi32> to vector<8x64xi32>
    %34 = arith.cmpi eq, %1, %33 : vector<8x64xi32>
    %35 = arith.extui %34 : vector<8x64xi1> to vector<8x64xi32>
    %36 = arith.sitofp %35 : vector<8x64xi32> to vector<8x64xf32>
    %37 = vector.extract_strided_slice %0 {offsets = [0, 7], sizes = [8, 1], strides = [1, 1]} : vector<8x8xi32> to vector<8x1xi32>
    %38 = vector.broadcast %37 : vector<8x1xi32> to vector<8x64xi32>
    %39 = arith.cmpi eq, %1, %38 : vector<8x64xi32>
    %40 = arith.extui %39 : vector<8x64xi1> to vector<8x64xi32>
    %41 = arith.sitofp %40 : vector<8x64xi32> to vector<8x64xf32>
    %42 = tpu.concatenate %6, %11, %16, %21, %26, %31, %36, %41 in 1 : vector<8x64xf32>, vector<8x64xf32>, vector<8x64xf32>, vector<8x64xf32>, vector<8x64xf32>, vector<8x64xf32>, vector<8x64xf32>, vector<8x64xf32> -> vector<8x512xf32>
    %c0_1 = arith.constant 0 : index
    %c0_2 = arith.constant 0 : index
    %43 = vector.load %arg3[%c0_1, %c0_2] : memref<512x64xf32, #tpu.memory_space<vmem>>, vector<512x64xf32>
    %cst = arith.constant dense<0.000000e+00> : vector<8x64xf32>
    %44 = tpu.matmul %42, %43, %cst {dimension_numbers = #tpu.dot_dimension_numbers<[1], [0], [0], [1], [0, 0, 1, 1], [], []>} : vector<8x512xf32>, vector<512x64xf32>, vector<8x64xf32> -> vector<8x64xf32>
    %c0_3 = arith.constant 0 : index
    %c0_4 = arith.constant 0 : index
    %45 = vector.load %arg1[%c0_3, %c0_4] : memref<8x5xf32, #tpu.memory_space<vmem>>, vector<8x5xf32>
    %c0_5 = arith.constant 0 : index
    %c0_6 = arith.constant 0 : index
    %46 = vector.load %arg4[%c0_5, %c0_6] : memref<5x64xf32, #tpu.memory_space<vmem>>, vector<5x64xf32>
    %cst_7 = arith.constant dense<0.000000e+00> : vector<8x64xf32>
    %47 = tpu.matmul %45, %46, %cst_7 {dimension_numbers = #tpu.dot_dimension_numbers<[1], [0], [0], [1], [0, 0, 1, 1], [], []>} : vector<8x5xf32>, vector<5x64xf32>, vector<8x64xf32> -> vector<8x64xf32>
    %c0_8 = arith.constant 0 : index
    %c0_9 = arith.constant 0 : index
    %48 = vector.load %arg5[%c0_8, %c0_9] : memref<1x64xf32, #tpu.memory_space<vmem>>, vector<1x64xf32>
    %49 = vector.broadcast %48 : vector<1x64xf32> to vector<8x64xf32>
    %50 = arith.addf %47, %49 : vector<8x64xf32>
    %cst_10 = arith.constant 0.000000e+00 : f32
    %51 = vector.broadcast %cst_10 : f32 to vector<8x64xf32>
    %52 = arith.maximumf %50, %51 : vector<8x64xf32>
    %c0_11 = arith.constant 0 : index
    %c0_12 = arith.constant 0 : index
    %53 = vector.load %arg2[%c0_11, %c0_12] : memref<40x7xf32, #tpu.memory_space<vmem>>, vector<40x7xf32>
    %c0_13 = arith.constant 0 : index
    %c0_14 = arith.constant 0 : index
    %54 = vector.load %arg6[%c0_13, %c0_14] : memref<7x128xf32, #tpu.memory_space<vmem>>, vector<7x128xf32>
    %cst_15 = arith.constant dense<0.000000e+00> : vector<40x128xf32>
    %55 = tpu.matmul %53, %54, %cst_15 {dimension_numbers = #tpu.dot_dimension_numbers<[1], [0], [0], [1], [0, 0, 1, 1], [], []>} : vector<40x7xf32>, vector<7x128xf32>, vector<40x128xf32> -> vector<40x128xf32>
    %c0_16 = arith.constant 0 : index
    %c0_17 = arith.constant 0 : index
    %56 = vector.load %arg7[%c0_16, %c0_17] : memref<1x128xf32, #tpu.memory_space<vmem>>, vector<1x128xf32>
    %57 = vector.broadcast %56 : vector<1x128xf32> to vector<40x128xf32>
    %58 = arith.addf %55, %57 : vector<40x128xf32>
    %59 = tpu.iota {dimensions = array<i32: 1>} : vector<8x128xi32>
    %c64_i32 = arith.constant 64 : i32
    %60 = vector.broadcast %c64_i32 : i32 to vector<8x128xi32>
    %61 = arith.cmpi slt, %59, %60 : vector<8x128xi32>
    %c96_i32 = arith.constant 96 : i32
    %62 = vector.broadcast %c96_i32 : i32 to vector<8x128xi32>
    %63 = arith.cmpi sge, %59, %62 : vector<8x128xi32>
    %64 = arith.ori %61, %63 : vector<8x128xi1>
    %cst_18 = arith.constant 0.000000e+00 : f32
    %65 = vector.broadcast %cst_18 : f32 to vector<8x32xf32>
    %cst_19 = arith.constant 0.000000e+00 : f32
    %66 = vector.broadcast %cst_19 : f32 to vector<8x32xf32>
    %67 = vector.extract_strided_slice %58 {offsets = [0, 0], sizes = [8, 128], strides = [1, 1]} : vector<40x128xf32> to vector<8x128xf32>
    %c0_20 = arith.constant 0 : index
    %c0_21 = arith.constant 0 : index
    %68 = vector.load %arg8[%c0_20, %c0_21] : memref<32x128xf32, #tpu.memory_space<vmem>>, vector<32x128xf32>
    %cst_22 = arith.constant dense<0.000000e+00> : vector<8x128xf32>
    %69 = tpu.matmul %65, %68, %cst_22 {dimension_numbers = #tpu.dot_dimension_numbers<[1], [0], [0], [1], [0, 0, 1, 1], [], []>} : vector<8x32xf32>, vector<32x128xf32>, vector<8x128xf32> -> vector<8x128xf32>
    %70 = arith.addf %67, %69 : vector<8x128xf32>
    %cst_23 = arith.constant 5.000000e-01 : f32
    %71 = vector.broadcast %cst_23 : f32 to vector<8x128xf32>
    %72 = arith.mulf %70, %71 : vector<8x128xf32>
    %73 = arith.select %64, %72, %70 : vector<8x128xi1>, vector<8x128xf32>
    %74 = math.tanh %73 : vector<8x128xf32>
    %cst_24 = arith.constant 5.000000e-01 : f32
    %75 = vector.broadcast %cst_24 : f32 to vector<8x128xf32>
    %76 = arith.mulf %75, %74 : vector<8x128xf32>
    %cst_25 = arith.constant 5.000000e-01 : f32
    %77 = vector.broadcast %cst_25 : f32 to vector<8x128xf32>
    %78 = arith.addf %76, %77 : vector<8x128xf32>
    %79 = arith.select %64, %78, %74 : vector<8x128xi1>, vector<8x128xf32>
    %80 = vector.extract_strided_slice %79 {offsets = [0, 0], sizes = [8, 32], strides = [1, 1]} : vector<8x128xf32> to vector<8x32xf32>
    %81 = vector.extract_strided_slice %79 {offsets = [0, 32], sizes = [8, 32], strides = [1, 1]} : vector<8x128xf32> to vector<8x32xf32>
    %82 = vector.extract_strided_slice %79 {offsets = [0, 64], sizes = [8, 32], strides = [1, 1]} : vector<8x128xf32> to vector<8x32xf32>
    %83 = vector.extract_strided_slice %79 {offsets = [0, 96], sizes = [8, 32], strides = [1, 1]} : vector<8x128xf32> to vector<8x32xf32>
    %84 = arith.mulf %81, %66 : vector<8x32xf32>
    %85 = arith.mulf %80, %82 : vector<8x32xf32>
    %86 = arith.addf %84, %85 : vector<8x32xf32>
    %87 = math.tanh %86 : vector<8x32xf32>
    %88 = arith.mulf %83, %87 : vector<8x32xf32>
    %89 = vector.extract_strided_slice %58 {offsets = [8, 0], sizes = [8, 128], strides = [1, 1]} : vector<40x128xf32> to vector<8x128xf32>
    %c0_26 = arith.constant 0 : index
    %c0_27 = arith.constant 0 : index
    %90 = vector.load %arg8[%c0_26, %c0_27] : memref<32x128xf32, #tpu.memory_space<vmem>>, vector<32x128xf32>
    %cst_28 = arith.constant dense<0.000000e+00> : vector<8x128xf32>
    %91 = tpu.matmul %88, %90, %cst_28 {dimension_numbers = #tpu.dot_dimension_numbers<[1], [0], [0], [1], [0, 0, 1, 1], [], []>} : vector<8x32xf32>, vector<32x128xf32>, vector<8x128xf32> -> vector<8x128xf32>
    %92 = arith.addf %89, %91 : vector<8x128xf32>
    %cst_29 = arith.constant 5.000000e-01 : f32
    %93 = vector.broadcast %cst_29 : f32 to vector<8x128xf32>
    %94 = arith.mulf %92, %93 : vector<8x128xf32>
    %95 = arith.select %64, %94, %92 : vector<8x128xi1>, vector<8x128xf32>
    %96 = math.tanh %95 : vector<8x128xf32>
    %cst_30 = arith.constant 5.000000e-01 : f32
    %97 = vector.broadcast %cst_30 : f32 to vector<8x128xf32>
    %98 = arith.mulf %97, %96 : vector<8x128xf32>
    %cst_31 = arith.constant 5.000000e-01 : f32
    %99 = vector.broadcast %cst_31 : f32 to vector<8x128xf32>
    %100 = arith.addf %98, %99 : vector<8x128xf32>
    %101 = arith.select %64, %100, %96 : vector<8x128xi1>, vector<8x128xf32>
    %102 = vector.extract_strided_slice %101 {offsets = [0, 0], sizes = [8, 32], strides = [1, 1]} : vector<8x128xf32> to vector<8x32xf32>
    %103 = vector.extract_strided_slice %101 {offsets = [0, 32], sizes = [8, 32], strides = [1, 1]} : vector<8x128xf32> to vector<8x32xf32>
    %104 = vector.extract_strided_slice %101 {offsets = [0, 64], sizes = [8, 32], strides = [1, 1]} : vector<8x128xf32> to vector<8x32xf32>
    %105 = vector.extract_strided_slice %101 {offsets = [0, 96], sizes = [8, 32], strides = [1, 1]} : vector<8x128xf32> to vector<8x32xf32>
    %106 = arith.mulf %103, %86 : vector<8x32xf32>
    %107 = arith.mulf %102, %104 : vector<8x32xf32>
    %108 = arith.addf %106, %107 : vector<8x32xf32>
    %109 = math.tanh %108 : vector<8x32xf32>
    %110 = arith.mulf %105, %109 : vector<8x32xf32>
    %111 = vector.extract_strided_slice %58 {offsets = [16, 0], sizes = [8, 128], strides = [1, 1]} : vector<40x128xf32> to vector<8x128xf32>
    %c0_32 = arith.constant 0 : index
    %c0_33 = arith.constant 0 : index
    %112 = vector.load %arg8[%c0_32, %c0_33] : memref<32x128xf32, #tpu.memory_space<vmem>>, vector<32x128xf32>
    %cst_34 = arith.constant dense<0.000000e+00> : vector<8x128xf32>
    %113 = tpu.matmul %110, %112, %cst_34 {dimension_numbers = #tpu.dot_dimension_numbers<[1], [0], [0], [1], [0, 0, 1, 1], [], []>} : vector<8x32xf32>, vector<32x128xf32>, vector<8x128xf32> -> vector<8x128xf32>
    %114 = arith.addf %111, %113 : vector<8x128xf32>
    %cst_35 = arith.constant 5.000000e-01 : f32
    %115 = vector.broadcast %cst_35 : f32 to vector<8x128xf32>
    %116 = arith.mulf %114, %115 : vector<8x128xf32>
    %117 = arith.select %64, %116, %114 : vector<8x128xi1>, vector<8x128xf32>
    %118 = math.tanh %117 : vector<8x128xf32>
    %cst_36 = arith.constant 5.000000e-01 : f32
    %119 = vector.broadcast %cst_36 : f32 to vector<8x128xf32>
    %120 = arith.mulf %119, %118 : vector<8x128xf32>
    %cst_37 = arith.constant 5.000000e-01 : f32
    %121 = vector.broadcast %cst_37 : f32 to vector<8x128xf32>
    %122 = arith.addf %120, %121 : vector<8x128xf32>
    %123 = arith.select %64, %122, %118 : vector<8x128xi1>, vector<8x128xf32>
    %124 = vector.extract_strided_slice %123 {offsets = [0, 0], sizes = [8, 32], strides = [1, 1]} : vector<8x128xf32> to vector<8x32xf32>
    %125 = vector.extract_strided_slice %123 {offsets = [0, 32], sizes = [8, 32], strides = [1, 1]} : vector<8x128xf32> to vector<8x32xf32>
    %126 = vector.extract_strided_slice %123 {offsets = [0, 64], sizes = [8, 32], strides = [1, 1]} : vector<8x128xf32> to vector<8x32xf32>
    %127 = vector.extract_strided_slice %123 {offsets = [0, 96], sizes = [8, 32], strides = [1, 1]} : vector<8x128xf32> to vector<8x32xf32>
    %128 = arith.mulf %125, %108 : vector<8x32xf32>
    %129 = arith.mulf %124, %126 : vector<8x32xf32>
    %130 = arith.addf %128, %129 : vector<8x32xf32>
    %131 = math.tanh %130 : vector<8x32xf32>
    %132 = arith.mulf %127, %131 : vector<8x32xf32>
    %133 = vector.extract_strided_slice %58 {offsets = [24, 0], sizes = [8, 128], strides = [1, 1]} : vector<40x128xf32> to vector<8x128xf32>
    %c0_38 = arith.constant 0 : index
    %c0_39 = arith.constant 0 : index
    %134 = vector.load %arg8[%c0_38, %c0_39] : memref<32x128xf32, #tpu.memory_space<vmem>>, vector<32x128xf32>
    %cst_40 = arith.constant dense<0.000000e+00> : vector<8x128xf32>
    %135 = tpu.matmul %132, %134, %cst_40 {dimension_numbers = #tpu.dot_dimension_numbers<[1], [0], [0], [1], [0, 0, 1, 1], [], []>} : vector<8x32xf32>, vector<32x128xf32>, vector<8x128xf32> -> vector<8x128xf32>
    %136 = arith.addf %133, %135 : vector<8x128xf32>
    %cst_41 = arith.constant 5.000000e-01 : f32
    %137 = vector.broadcast %cst_41 : f32 to vector<8x128xf32>
    %138 = arith.mulf %136, %137 : vector<8x128xf32>
    %139 = arith.select %64, %138, %136 : vector<8x128xi1>, vector<8x128xf32>
    %140 = math.tanh %139 : vector<8x128xf32>
    %cst_42 = arith.constant 5.000000e-01 : f32
    %141 = vector.broadcast %cst_42 : f32 to vector<8x128xf32>
    %142 = arith.mulf %141, %140 : vector<8x128xf32>
    %cst_43 = arith.constant 5.000000e-01 : f32
    %143 = vector.broadcast %cst_43 : f32 to vector<8x128xf32>
    %144 = arith.addf %142, %143 : vector<8x128xf32>
    %145 = arith.select %64, %144, %140 : vector<8x128xi1>, vector<8x128xf32>
    %146 = vector.extract_strided_slice %145 {offsets = [0, 0], sizes = [8, 32], strides = [1, 1]} : vector<8x128xf32> to vector<8x32xf32>
    %147 = vector.extract_strided_slice %145 {offsets = [0, 32], sizes = [8, 32], strides = [1, 1]} : vector<8x128xf32> to vector<8x32xf32>
    %148 = vector.extract_strided_slice %145 {offsets = [0, 64], sizes = [8, 32], strides = [1, 1]} : vector<8x128xf32> to vector<8x32xf32>
    %149 = vector.extract_strided_slice %145 {offsets = [0, 96], sizes = [8, 32], strides = [1, 1]} : vector<8x128xf32> to vector<8x32xf32>
    %150 = arith.mulf %147, %130 : vector<8x32xf32>
    %151 = arith.mulf %146, %148 : vector<8x32xf32>
    %152 = arith.addf %150, %151 : vector<8x32xf32>
    %153 = math.tanh %152 : vector<8x32xf32>
    %154 = arith.mulf %149, %153 : vector<8x32xf32>
    %155 = vector.extract_strided_slice %58 {offsets = [32, 0], sizes = [8, 128], strides = [1, 1]} : vector<40x128xf32> to vector<8x128xf32>
    %c0_44 = arith.constant 0 : index
    %c0_45 = arith.constant 0 : index
    %156 = vector.load %arg8[%c0_44, %c0_45] : memref<32x128xf32, #tpu.memory_space<vmem>>, vector<32x128xf32>
    %cst_46 = arith.constant dense<0.000000e+00> : vector<8x128xf32>
    %157 = tpu.matmul %154, %156, %cst_46 {dimension_numbers = #tpu.dot_dimension_numbers<[1], [0], [0], [1], [0, 0, 1, 1], [], []>} : vector<8x32xf32>, vector<32x128xf32>, vector<8x128xf32> -> vector<8x128xf32>
    %158 = arith.addf %155, %157 : vector<8x128xf32>
    %cst_47 = arith.constant 5.000000e-01 : f32
    %159 = vector.broadcast %cst_47 : f32 to vector<8x128xf32>
    %160 = arith.mulf %158, %159 : vector<8x128xf32>
    %161 = arith.select %64, %160, %158 : vector<8x128xi1>, vector<8x128xf32>
    %162 = math.tanh %161 : vector<8x128xf32>
    %cst_48 = arith.constant 5.000000e-01 : f32
    %163 = vector.broadcast %cst_48 : f32 to vector<8x128xf32>
    %164 = arith.mulf %163, %162 : vector<8x128xf32>
    %cst_49 = arith.constant 5.000000e-01 : f32
    %165 = vector.broadcast %cst_49 : f32 to vector<8x128xf32>
    %166 = arith.addf %164, %165 : vector<8x128xf32>
    %167 = arith.select %64, %166, %162 : vector<8x128xi1>, vector<8x128xf32>
    %168 = vector.extract_strided_slice %167 {offsets = [0, 0], sizes = [8, 32], strides = [1, 1]} : vector<8x128xf32> to vector<8x32xf32>
    %169 = vector.extract_strided_slice %167 {offsets = [0, 32], sizes = [8, 32], strides = [1, 1]} : vector<8x128xf32> to vector<8x32xf32>
    %170 = vector.extract_strided_slice %167 {offsets = [0, 64], sizes = [8, 32], strides = [1, 1]} : vector<8x128xf32> to vector<8x32xf32>
    %171 = vector.extract_strided_slice %167 {offsets = [0, 96], sizes = [8, 32], strides = [1, 1]} : vector<8x128xf32> to vector<8x32xf32>
    %172 = arith.mulf %169, %152 : vector<8x32xf32>
    %173 = arith.mulf %168, %170 : vector<8x32xf32>
    %174 = arith.addf %172, %173 : vector<8x32xf32>
    %175 = math.tanh %174 : vector<8x32xf32>
    %176 = arith.mulf %171, %175 : vector<8x32xf32>
    %177 = tpu.concatenate %44, %52, %176 in 1 : vector<8x64xf32>, vector<8x64xf32>, vector<8x32xf32> -> vector<8x160xf32>
    %c0_50 = arith.constant 0 : index
    %c0_51 = arith.constant 0 : index
    %178 = vector.load %arg9[%c0_50, %c0_51] : memref<160x64xf32, #tpu.memory_space<vmem>>, vector<160x64xf32>
    %cst_52 = arith.constant dense<0.000000e+00> : vector<8x64xf32>
    %179 = tpu.matmul %177, %178, %cst_52 {dimension_numbers = #tpu.dot_dimension_numbers<[1], [0], [0], [1], [0, 0, 1, 1], [], []>} : vector<8x160xf32>, vector<160x64xf32>, vector<8x64xf32> -> vector<8x64xf32>
    %c0_53 = arith.constant 0 : index
    %c0_54 = arith.constant 0 : index
    %180 = vector.load %arg10[%c0_53, %c0_54] : memref<1x64xf32, #tpu.memory_space<vmem>>, vector<1x64xf32>
    %181 = vector.broadcast %180 : vector<1x64xf32> to vector<8x64xf32>
    %182 = arith.addf %179, %181 : vector<8x64xf32>
    %cst_55 = arith.constant 0.000000e+00 : f32
    %183 = vector.broadcast %cst_55 : f32 to vector<8x64xf32>
    %184 = arith.maximumf %182, %183 : vector<8x64xf32>
    %c0_56 = arith.constant 0 : index
    %c0_57 = arith.constant 0 : index
    %185 = vector.load %arg11[%c0_56, %c0_57] : memref<64x64xf32, #tpu.memory_space<vmem>>, vector<64x64xf32>
    %cst_58 = arith.constant dense<0.000000e+00> : vector<8x64xf32>
    %186 = tpu.matmul %184, %185, %cst_58 {dimension_numbers = #tpu.dot_dimension_numbers<[1], [0], [0], [1], [0, 0, 1, 1], [], []>} : vector<8x64xf32>, vector<64x64xf32>, vector<8x64xf32> -> vector<8x64xf32>
    %c0_59 = arith.constant 0 : index
    %c0_60 = arith.constant 0 : index
    %187 = vector.load %arg12[%c0_59, %c0_60] : memref<1x64xf32, #tpu.memory_space<vmem>>, vector<1x64xf32>
    %188 = vector.broadcast %187 : vector<1x64xf32> to vector<8x64xf32>
    %189 = arith.addf %186, %188 : vector<8x64xf32>
    %cst_61 = arith.constant 0.000000e+00 : f32
    %190 = vector.broadcast %cst_61 : f32 to vector<8x64xf32>
    %191 = arith.maximumf %189, %190 : vector<8x64xf32>
    %c0_62 = arith.constant 0 : index
    %c0_63 = arith.constant 0 : index
    %192 = vector.load %arg13[%c0_62, %c0_63] : memref<1x64xf32, #tpu.memory_space<vmem>>, vector<1x64xf32>
    %193 = vector.broadcast %192 : vector<1x64xf32> to vector<8x64xf32>
    %194 = arith.mulf %191, %193 : vector<8x64xf32>
    %cst_64 = arith.constant dense<0.000000e+00> : vector<8xf32>
    %195 = vector.multi_reduction <add>, %194, %cst_64 [1] : vector<8x64xf32> to vector<8xf32>
    %196 = vector.shape_cast %195 : vector<8xf32> to vector<8x1xf32>
    %c0_65 = arith.constant 0 : index
    %c0_66 = arith.constant 0 : index
    %197 = vector.load %arg14[%c0_65, %c0_66] : memref<1x1xf32, #tpu.memory_space<vmem>>, vector<1x1xf32>
    %198 = vector.broadcast %197 : vector<1x1xf32> to vector<8x1xf32>
    %199 = arith.addf %196, %198 : vector<8x1xf32>
    %c0_67 = arith.constant 0 : index
    %c0_68 = arith.constant 0 : index
    %200 = vector.load %arg15[%c0_67, %c0_68] : memref<8x1xf32, #tpu.memory_space<vmem>>, vector<8x1xf32>
    tpu.vector_store %arg15[%c0_67, %c0_68], %199 {strides = array<i32>} : memref<8x1xf32, #tpu.memory_space<vmem>>, vector<8x1xf32>,
    return
  }
}

</mosaic_0001>

<bundles_post_ra>
// kernel: tpu_custom_call.1
= control target key start
LH: loop header
LB: loop body
LE: loop exit
PB: predicated region body
PF: predicated region fallthrough
CT: control target
= control target key end

     0   :  { %v1701_v0 = vmov 7   ;;  %v1702_v2 = vmov 6   ;;  %v1703_v3 = vmov 5   ;;  %v1704_v4 = vmov 4   ;;  %s1706_s20 = smov 64   ;;  %s2314_s0 = inlined_call_operand.vmem [shape: s32[8,8], index: 0, kind: input, shape index: {}]   ;;  %s2315_s3 = inlined_call_operand.vmem [shape: f32[512,64], index: 3, kind: input, shape index: {}]   ;;  %s2316_s6 = inlined_call_operand.vmem [shape: f32[7,128], index: 6, kind: input, shape index: {}]   ;;  %s2317_s8 = inlined_call_operand.vmem [shape: f32[32,128], index: 8, kind: input, shape index: {}]   ;;  %s2318_s2 = inlined_call_operand.vmem [shape: f32[40,7], index: 2, kind: input, shape index: {}]   ;;  %s2319_s7 = inlined_call_operand.vmem [shape: f32[1,128], index: 7, kind: input, shape index: {}]   ;;  %s2320_s4 = inlined_call_operand.vmem [shape: f32[5,64], index: 4, kind: input, shape index: {}]   ;;  %s2321_s1 = inlined_call_operand.vmem [shape: f32[8,5], index: 1, kind: input, shape index: {}]   ;;  %s2322_s5 = inlined_call_operand.vmem [shape: f32[1,64], index: 5, kind: input, shape index: {}]   ;;  %s2323_s9 = inlined_call_operand.vmem [shape: f32[160,64], index: 9, kind: input, shape index: {}]   ;;  %s2324_s11 = inlined_call_operand.vmem [shape: f32[64,64], index: 11, kind: input, shape index: {}]   ;;  %s2325_s10 = inlined_call_operand.vmem [shape: f32[1,64], index: 10, kind: input, shape index: {}]   ;;  %s2326_s14 = inlined_call_operand.<no memory space> [shape: f32[1,1], index: 14, kind: input, shape index: {}]   ;;  %s2327_s12 = inlined_call_operand.vmem [shape: f32[1,64], index: 12, kind: input, shape index: {}]   ;;  %s2328_s13 = inlined_call_operand.vmem [shape: f32[1,64], index: 13, kind: input, shape index: {}]   ;;  %s2329_s15 = inlined_call_operand.vmem [shape: f32[8,1], index: 15, kind: output, shape index: {}]  }
   0x1   :  { %1662 = vset.pattern.permute.xlu0 %v1701_v0  ;;  %v1798_v1 = vld [vmem:[%s2314_s0] sm:$0xff]  ;;  %1664 = vset.pattern.permute.xlu1 %v1702_v2  ;;  %v173_v6 = vld [vmem:[%s2315_s3 + $0x188] sm:$0xff]  ;;  %v174_v10 = vld [vmem:[%s2315_s3 + $0x190] sm:$0xff]  ;;  %v53_v52 = vlaneseq  ;;  %v1705_v54 = vmov 0.0   ;;  %vm119_vm4 = vcmask 523264   ;;  %vm445_vm5 = vcmask 1046528  }
   0x2   :  { %98 = vperm.xlu0 %1662, %v1798_v1   ;;  %92 = vperm.xlu1 %1664, %v1798_v1   ;;  %v172_v5 = vld [vmem:[%s2315_s3 + $0x180] sm:$0xff]  ;;  %v157_v9 = vld [vmem:[%s2315_s3 + $0x108] sm:$0xff]  ;;  %v175_v11 = vld [vmem:[%s2315_s3 + $0x198] sm:$0xff]  ;;  %vm1707_vm6 = vmmov 0   ;;  %vm429_vm7 = vcmask 56320   ;;  %vm546_vm11 = vcmask 261120  }
   0x3   :  { %v156_v7 = vld [vmem:[%s2315_s3 + $0x100] sm:$0xff]  ;;  %v1530_v8 = vpack.c.bf16 %v173_v6, %v172_v5  ;;  %v1534_v13 = vpack.c.bf16 %v175_v11, %v174_v10  ;;  %v158_v14 = vld [vmem:[%s2315_s3 + $0x110] sm:$0xff]  ;;  %v159_v15 = vld [vmem:[%s2315_s3 + $0x118] sm:$0xff]  ;;  %v1901_v55 = vand.u32 127, %v53_v52 }
   0x4   :  { %v1532_v12 = vpack.c.bf16 %v157_v9, %v156_v7  ;;  %v176_v16 = vld [vmem:[%s2315_s3 + $0x1a0] sm:$0xff]  ;;  %v177_v17 = vld [vmem:[%s2315_s3 + $0x1a8] sm:$0xff]  ;;  %v1536_v18 = vpack.c.bf16 %v159_v15, %v158_v14  ;;  %v178_v22 = vld [vmem:[%s2315_s3 + $0x1b0] sm:$0xff] }
   0x5   :  { %1531 = vmatprep.subr.bf16.mxu1 %v1530_v8  ;;  %v1538_v19 = vpack.c.bf16 %v177_v17, %v176_v16  ;;  %v160_v20 = vld [vmem:[%s2315_s3 + $0x120] sm:$0xff]  ;;  %v161_v21 = vld [vmem:[%s2315_s3 + $0x128] sm:$0xff]  ;;  %v179_v23 = vld [vmem:[%s2315_s3 + $0x1b8] sm:$0xff]  ;;  %vm539_vm8 = vcmp.lt.s32.totalorder %v1901_v55, 64  ;;  %vm540_vm9 = vcmp.ge.s32.totalorder %v1901_v55, 96 }
   0x6   :  { %1663 = vset.pattern.permute.xlu0 %v1703_v3  ;;  %1665 = vset.pattern.permute.xlu1 %v1704_v4  ;;  %v1540_v24 = vpack.c.bf16 %v161_v21, %v160_v20  ;;  %v1542_v25 = vpack.c.bf16 %v179_v23, %v178_v22  ;;  %v162_v26 = vld [vmem:[%s2315_s3 + $0x130] sm:$0xff]  ;;  %v163_v27 = vld [vmem:[%s2315_s3 + $0x138] sm:$0xff]  ;;  %v180_v28 = vld [vmem:[%s2315_s3 + $0x1c0] sm:$0xff] }
   0x7   :  { %86 = vperm.xlu0 %1663, %v1798_v1   ;;  %80 = vperm.xlu1 %1665, %v1798_v1   ;;  %v181_v29 = vld [vmem:[%s2315_s3 + $0x1c8] sm:$0xff]  ;;  %v1544_v30 = vpack.c.bf16 %v163_v27, %v162_v26  ;;  %v164_v32 = vld [vmem:[%s2315_s3 + $0x140] sm:$0xff]  ;;  %v182_v34 = vld [vmem:[%s2315_s3 + $0x1d0] sm:$0xff] }
   0x8   :  { %1533 = vmatpush3.bf16.msra.mxu1 %v1532_v12  ;;  %v1546_v31 = vpack.c.bf16 %v181_v29, %v180_v28  ;;  %v165_v33 = vld [vmem:[%s2315_s3 + $0x148] sm:$0xff]  ;;  %v183_v35 = vld [vmem:[%s2315_s3 + $0x1d8] sm:$0xff]  ;;  %v166_v38 = vld [vmem:[%s2315_s3 + $0x150] sm:$0xff] }
   0x9   :  { %1535 = vmatprep.subr.bf16.mxu1 %v1534_v13  ;;  %v1548_v36 = vpack.c.bf16 %v165_v33, %v164_v32  ;;  %v1550_v37 = vpack.c.bf16 %v183_v35, %v182_v34  ;;  %v167_v39 = vld [vmem:[%s2315_s3 + $0x158] sm:$0xff]  ;;  %v184_v40 = vld [vmem:[%s2315_s3 + $0x1e0] sm:$0xff]  ;;  %v185_v41 = vld [vmem:[%s2315_s3 + $0x1e8] sm:$0xff]  ;;  %v1708_v13 = vmov 0.0|0.0  }
   0xa   :  { %v1552_v42 = vpack.c.bf16 %v167_v39, %v166_v38  ;;  %v1554_v43 = vpack.c.bf16 %v185_v41, %v184_v40  ;;  %v168_v44 = vld [vmem:[%s2315_s3 + $0x160] sm:$0xff]  ;;  %v169_v45 = vld [vmem:[%s2315_s3 + $0x168] sm:$0xff]  ;;  %v186_v46 = vld [vmem:[%s2315_s3 + $0x1f0] sm:$0xff] }
   0xb   :  { %v187_v47 = vld [vmem:[%s2315_s3 + $0x1f8] sm:$0xff]  ;;  %v1556_v48 = vpack.c.bf16 %v169_v45, %v168_v44  ;;  %v170_v50 = vld [vmem:[%s2315_s3 + $0x170] sm:$0xff]  ;;  %v421_v8 = vld [vmem:[%s2316_s6] sm:$0x7f] }
   0xc   :  { %1537 = vmatpush3.bf16.msra.mxu1 %v1536_v18  ;;  %v1558_v49 = vpack.c.bf16 %v187_v47, %v186_v46  ;;  %v171_v51 = vld [vmem:[%s2315_s3 + $0x178] sm:$0xff]  ;;  %v542_v9 = vld [vmem:[%s2317_s8] sm:$0xff]  ;;  %v543_v10 = vld [vmem:[%s2317_s8 + $0x8] sm:$0xff] }
   0xd   :  { %1539 = vmatprep.subr.bf16.mxu1 %v1538_v19  ;;  %v1560_v53 = vpack.c.bf16 %v171_v51, %v170_v50  ;;  %v416_v11 = vld [vmem:[%s2318_s2] sm:$0xff]  ;;  %v1928_v12 = vpack.c.bf16 %v543_v10, %v542_v9  ;;  %v544_v14 = vld [vmem:[%s2317_s8 + $0x10] sm:$0xff]  ;;  %v545_v15 = vld [vmem:[%s2317_s8 + $0x18] sm:$0xff] }
   0xe   :  { %v417_v16 = vld [vmem:[%s2318_s2 + $0x8] sm:$0xff]  ;;  %v1944_v17 = vpack.c.bf16 %v545_v15, %v544_v14  ;;  %v418_v18 = vld [vmem:[%s2318_s2 + $0x10] sm:$0xff]  ;;  %v419_v19 = vld [vmem:[%s2318_s2 + $0x18] sm:$0xff] }
   0xf   :  { %v420_v20 = vld [vmem:[%s2318_s2 + $0x20] sm:$0xff]  ;;  %vm1987_vm10 = vmor %vm539_vm8, %vm540_vm9 }
  0x10   :  { %1541 = vmatpush3.bf16.msra.mxu1 %v1540_v24  ;;  %v1982_v24 = vld [vmem:[%s2319_s7] ss:$0 sm:$0xff]  ;;  %s1709_s7 = smov 32  }
  0x11   :  { %1543 = vmatprep.subr.bf16.mxu1 %v1542_v25 }
  0x14   :  { %1545 = vmatpush3.bf16.msra.mxu1 %v1544_v30 }
  0x15   :  { %1547 = vmatprep.subr.bf16.mxu1 %v1546_v31 }
  0x18   :  { %1549 = vmatpush3.bf16.msra.mxu1 %v1548_v36 }
  0x19   :  { %1551 = vmatprep.subr.bf16.mxu1 %v1550_v37 }
  0x1c   :  { %1553 = vmatpush3.bf16.msra.mxu1 %v1552_v42 }
  0x1d   :  { %1555 = vmatprep.subr.bf16.mxu1 %v1554_v43 }
  0x20   :  { %1557 = vmatpush3.bf16.msra.mxu1 %v1556_v48 }
  0x21   :  { %1559 = vmatprep.subr.bf16.mxu1 %v1558_v49 }
  0x24   :  { %1561 = vmatpush3.bf16.msra.mxu1 %v1560_v53 }
  0x25   :  { %1407 = vmatprep.subr.mxu1 %v1705_v54 }
  0x81   :  { %v99_v56 = vpop.permute.xlu0 %98  ;;  %v93_v61 = vpop.permute.xlu1 %92 }
  0x82   :  { %vm100_vm0 = vcmp.eq.s32.totalorder %v1901_v55, %v99_v56  ;;  %vm94_vm2 = vcmp.eq.s32.totalorder %v1901_v55, %v93_v61 }
  0x83   :  { %v1269_v58 = vsel %vm100_vm0, 1.0, %v1705_v54  ;;  %v1268_v4 = vsel %vm94_vm2, 1.0, %v1705_v54  ;;  %vm341_vm0 = vcmask 1044480   ;;  %vm1256_vm2 = vcmask 7168  }
  0x86   :  { %v87_v57 = vpop.permute.xlu0 %86  ;;  %v81_v62 = vpop.permute.xlu1 %80 }
  0x87   :  { %vm88_vm1 = vcmp.eq.s32.totalorder %v1901_v55, %v87_v57  ;;  %vm82_vm3 = vcmp.eq.s32.totalorder %v1901_v55, %v81_v62 }
  0x88   :  { %v1267_v59 = vsel %vm88_vm1, 1.0, %v1705_v54  ;;  %v1266_v5 = vsel %vm82_vm3, 1.0, %v1705_v54  ;;  %vm337_vm1 = vcmask 39936  }
  0x89   :  { %v1666_v60 = vpack.i.bf16 %v1267_v59, %v1269_v58 }
  0x8b   :  { %1667 = vrot.lane.b32.xlu1 %v1666_v60, %s1706_s20 }
  0xfd   :  { %v1668_v63 = vpop.permute.xlu1 %1667 }
  0xfe   :  { %v1670_v2 = vunpack.i.h.bf16 %v1668_v63  ;;  %v1669_v3 = vunpack.i.l.bf16 %v1668_v63 }
 0x100   :  { %v123_v6 = vsel %vm119_vm4, %v1268_v4, %v1669_v3  ;;  %v122_v7 = vsel %vm119_vm4, %v1266_v5, %v1670_v2 }
 0x101   :  { %322 = vmatprep.mubr.f32.mxu1 %v123_v6 }
 0x102   :  { %323 = vmatmul.mubr.f32.vlgmr.msra.gmra.mrb[0].mxu1 %v122_v7 }
 0x103   :  { %1408 = vmatpush3.msk.msra.mxu1 %vm445_vm5, %v421_v8  ;;  %1409 = vmatprep.mubr.msk.f32.mxu1 %vm1707_vm6, %v1705_v54 }
 0x104   :  { %1562 = vmatprep.subr.bf16.mxu1 %v1708_v13 }
 0x106   :  { %1410 = vmatmul.mubr.msk.f32.vlgmr.msra.gmra.mrb[2].mxu1 %vm429_vm7, %v416_v11 }
 0x107   :  { %1564 = vmatpush3.bf16.msra.mxu1 %v1928_v12  ;;  %1412 = vmatprep.mubr.msk.f32.mxu1 %vm1707_vm6, %v1705_v54 }
 0x108   :  { %1565 = vmatprep.subr.bf16.mxu1 %v1708_v13 }
 0x10a   :  { %1413 = vmatmul.mubr.msk.f32.gmra.mrb[4].mxu1 %vm429_vm7, %v417_v16 }
 0x10b   :  { %1415 = vmatprep.mubr.msk.f32.mxu1 %vm1707_vm6, %v1705_v54  ;;  %1567 = vmatpush3.bf16.msra.mxu1 %v1944_v17 }
 0x10c   :  { %1568 = vmatprep.subr.bf16.mxu1 %v1708_v13 }
 0x10e   :  { %1416 = vmatmul.mubr.msk.f32.gmra.mrb[6].mxu1 %vm429_vm7, %v418_v18 }
 0x10f   :  { %1418 = vmatprep.mubr.msk.f32.mxu1 %vm1707_vm6, %v1705_v54 }
 0x112   :  { %1419 = vmatmul.mubr.msk.f32.gmra.mrb[8].mxu1 %vm429_vm7, %v419_v19 }
 0x113   :  { %1421 = vmatprep.mubr.msk.f32.mxu1 %vm1707_vm6, %v1705_v54 }
 0x116   :  { %1422 = vmatmul.mubr.msk.f32.gmra.mrb[10].mxu1 %vm429_vm7, %v420_v20 }
 0x117   :  { %1432 = vmatprep.mubr.msk.f32.mxu1 %vm1707_vm6, %v1705_v54 }
 0x11a   :  { %1433 = vmatmul.mubr.f32.vlgmr.msra.gmra.mrb[2].mxu1 %v1705_v54 }
 0x11b   :  { %1570 = vmatpush3.bf16.msra.mxu1 %v1928_v12  ;;  %1443 = vmatprep.mubr.msk.f32.mxu1 %vm1707_vm6, %v1705_v54 }
 0x11c   :  { %1571 = vmatprep.subr.bf16.mxu1 %v1708_v13 }
 0x11f   :  { %1573 = vmatpush3.bf16.msra.mxu1 %v1944_v17 }
 0x120   :  { %1574 = vmatprep.subr.bf16.mxu1 %v1708_v13 }
 0x1d5   :  { %v1357_v21 = vpop.f32.mrb[0].mxu1 }
 0x1d6   :  { %v1358_v22 = vpop.f32.mrb[1].mxu1 }
 0x1d7   :  { %v1977_v23 = vadd.f32 %v1358_v22, %v1357_v21 }
 0x1ed   :  { %v616_v25 = vpop.f32.mrb[2].mxu1 }
 0x1ee   :  { %v1634_v26 = vadd.f32 %v1982_v24, %v616_v25  ;;  %v1434_v27 = vpop.f32.mrb[3].mxu1 }
 0x1f0   :  { %v621_v29 = vmul.f32 0.5, %v1634_v26 }
 0x1f2   :  { %v622_v30 = vsel %vm1987_vm10, %v621_v29, %v1634_v26 }
 0x1f3   :  { %1681 = vtanh.f32 %v622_v30 }
 0x1fd   :  { %v1682_v31 = vpop.eup %1681 }
 0x1fe   :  { %v624_v32 = vmul.f32 0.5, %v1682_v31 }
 0x200   :  { %v625_v33 = vadd.f32 0.5, %v624_v32 }
 0x202   :  { %v626_v34 = vsel %vm1987_vm10, %v625_v33, %v1682_v31 }
 0x203   :  { %629 = vrot.lane.b32.xlu0 %v626_v34, %s1706_s20  ;;  %v627_v37 = vmul.f32 0.0, %v626_v34 }
 0x275   :  { %v630_v35 = vpop.permute.xlu0 %629 }
 0x276   :  { %v632_v36 = vmul.f32 %v630_v35, %v626_v34 }
 0x278   :  { %634 = vrot.lane.b32.xlu1 %v632_v36, %s1709_s7 }
 0x2ea   :  { %v635_v38 = vpop.permute.xlu1 %634 }
 0x2eb   :  { %v637_v39 = vadd.f32 %v635_v38, %v627_v37  ;;  %v1710_v38 = vmov 1  }
 0x2ec   :  { %1672 = vset.pattern.permute.xlu1 %v1710_v38 }
 0x2ed   :  { %1683 = vtanh.f32 %v637_v39 }
 0x2f7   :  { %v1684_v40 = vpop.eup %1683 }
 0x2f8   :  { %640 = vrot.lane.b32.xlu0 %v1684_v40, %s1706_s20 }
 0x36a   :  { %v641_v41 = vpop.permute.xlu0 %640 }
 0x36b   :  { %v643_v42 = vmul.f32 %v641_v41, %v626_v34  ;;  %v1712_v41 = vmov 0  }
 0x36d   :  { %645 = vrot.lane.b32.xlu1 %v643_v42, %s1709_s7 }
 0x3df   :  { %v646_v43 = vpop.permute.xlu1 %645 }
 0x3e0   :  { %1444 = vmatmul.mubr.msk.f32.vlgmr.msra.gmra.mrb[4].mxu1 %vm546_vm11, %v646_v43 }
 0x3e1   :  { %1576 = vmatpush3.bf16.msra.mxu1 %v1928_v12  ;;  %1454 = vmatprep.mubr.msk.f32.mxu1 %vm1707_vm6, %v1705_v54 }
 0x3e2   :  { %1577 = vmatprep.subr.bf16.mxu1 %v1708_v13 }
 0x3e5   :  { %1579 = vmatpush3.bf16.msra.mxu1 %v1944_v17 }
 0x3e6   :  { %1580 = vmatprep.subr.bf16.mxu1 %v1708_v13 }
 0x4b3   :  { %v715_v44 = vpop.f32.mrb[4].mxu1 }
 0x4b4   :  { %v1635_v45 = vadd.f32 %v1982_v24, %v715_v44  ;;  %v1445_v46 = vpop.f32.mrb[5].mxu1  ;;  %v1713_v44 = vmov 2  }
 0x4b5   :  { %v141_v46 = vld [vmem:[%s2315_s3 + $0x88] sm:$0xff] }
 0x4b6   :  { %v720_v47 = vmul.f32 0.5, %v1635_v45 }
 0x4b8   :  { %v721_v48 = vsel %vm1987_vm10, %v720_v47, %v1635_v45  ;;  %v140_v45 = vld [vmem:[%s2315_s3 + $0x80] sm:$0xff] }
 0x4b9   :  { %1685 = vtanh.f32 %v721_v48  ;;  %v1498_v47 = vpack.c.bf16 %v141_v46, %v140_v45  ;;  %v125_v48 = vld [vmem:[%s2315_s3 + $0x8] sm:$0xff] }
 0x4bb   :  { %1499 = vmatprep.subr.bf16.mxu0 %v1498_v47 }
 0x4c3   :  { %v1686_v49 = vpop.eup %1685 }
 0x4c4   :  { %v723_v50 = vmul.f32 0.5, %v1686_v49 }
 0x4c6   :  { %v724_v51 = vadd.f32 0.5, %v723_v50  ;;  %v143_v50 = vld [vmem:[%s2315_s3 + $0x98] sm:$0xff] }
 0x4c8   :  { %v725_v52 = vsel %vm1987_vm10, %v724_v51, %v1686_v49  ;;  %v142_v49 = vld [vmem:[%s2315_s3 + $0x90] sm:$0xff] }
 0x4c9   :  { %728 = vrot.lane.b32.xlu0 %v725_v52, %s1706_s20  ;;  %v726_v57 = vmul.f32 %v725_v52, %v637_v39  ;;  %v1711_v39 = vmov 3  }
 0x4ca   :  { %1671 = vset.pattern.permute.xlu0 %v1711_v39 }
 0x53b   :  { %v729_v53 = vpop.permute.xlu0 %728 }
 0x53c   :  { %v731_v56 = vmul.f32 %v729_v53, %v725_v52  ;;  %v126_v53 = vld [vmem:[%s2315_s3 + $0x10] sm:$0xff] }
 0x53e   :  { %733 = vrot.lane.b32.xlu1 %v731_v56, %s1709_s7  ;;  %v144_v56 = vld [vmem:[%s2315_s3 + $0xa0] sm:$0xff] }
 0x5b0   :  { %v734_v58 = vpop.permute.xlu1 %733 }
 0x5b1   :  { %v736_v59 = vadd.f32 %v734_v58, %v726_v57  ;;  %v145_v57 = vld [vmem:[%s2315_s3 + $0xa8] sm:$0xff] }
 0x5b3   :  { %1687 = vtanh.f32 %v736_v59 }
 0x5bd   :  { %v1688_v60 = vpop.eup %1687 }
 0x5be   :  { %739 = vrot.lane.b32.xlu0 %v1688_v60, %s1706_s20  ;;  %v128_v60 = vld [vmem:[%s2315_s3 + $0x20] sm:$0xff] }
 0x630   :  { %v740_v61 = vpop.permute.xlu0 %739 }
 0x631   :  { %v742_v62 = vmul.f32 %v740_v61, %v725_v52  ;;  %v1502_v52 = vpack.c.bf16 %v143_v50, %v142_v49  ;;  %v129_v61 = vld [vmem:[%s2315_s3 + $0x28] sm:$0xff]  ;;  %v329_v50 = vld [vmem:[%s2320_s4] sm:$0x1f] }
 0x633   :  { %744 = vrot.lane.b32.xlu1 %v742_v62, %s1709_s7  ;;  %v146_v62 = vld [vmem:[%s2315_s3 + $0xb0] sm:$0xff] }
 0x6a5   :  { %v745_v63 = vpop.permute.xlu1 %744 }
 0x6a6   :  { %1455 = vmatmul.mubr.msk.f32.vlgmr.msra.gmra.mrb[6].mxu1 %vm546_vm11, %v745_v63  ;;  %v147_v63 = vld [vmem:[%s2315_s3 + $0xb8] sm:$0xff] }
 0x6a7   :  { %1582 = vmatpush3.bf16.msra.mxu1 %v1928_v12  ;;  %1465 = vmatprep.mubr.msk.f32.mxu1 %vm1707_vm6, %v1705_v54 }
 0x6a8   :  { %1583 = vmatprep.subr.bf16.mxu1 %v1708_v13 }
 0x6ab   :  { %1585 = vmatpush3.bf16.msra.mxu1 %v1944_v17 }
 0x6ac   :  { %1586 = vmatprep.subr.bf16.mxu1 %v1708_v13 }
 0x779   :  { %v814_v2 = vpop.f32.mrb[6].mxu1 }
 0x77a   :  { %v1636_v3 = vadd.f32 %v1982_v24, %v814_v2  ;;  %v1456_v4 = vpop.f32.mrb[7].mxu1  ;;  %v1508_v2 = vpack.c.bf16 %v129_v61, %v128_v60 }
 0x77b   :  { %v130_v4 = vld [vmem:[%s2315_s3 + $0x30] sm:$0xff] }
 0x77c   :  { %v819_v5 = vmul.f32 0.5, %v1636_v3 }
 0x77e   :  { %v820_v6 = vsel %vm1987_vm10, %v819_v5, %v1636_v3  ;;  %v1510_v3 = vpack.c.bf16 %v147_v63, %v146_v62  ;;  %v131_v5 = vld [vmem:[%s2315_s3 + $0x38] sm:$0xff] }
 0x77f   :  { %1689 = vtanh.f32 %v820_v6  ;;  %v148_v6 = vld [vmem:[%s2315_s3 + $0xc0] sm:$0xff] }
 0x789   :  { %v1690_v7 = vpop.eup %1689 }
 0x78a   :  { %v822_v8 = vmul.f32 0.5, %v1690_v7 }
 0x78c   :  { %v823_v9 = vadd.f32 0.5, %v822_v8  ;;  %v1512_v8 = vpack.c.bf16 %v131_v5, %v130_v4 }
 0x78e   :  { %v824_v10 = vsel %vm1987_vm10, %v823_v9, %v1690_v7  ;;  %v149_v7 = vld [vmem:[%s2315_s3 + $0xc8] sm:$0xff] }
 0x78f   :  { %827 = vrot.lane.b32.xlu0 %v824_v10, %s1706_s20  ;;  %v825_v15 = vmul.f32 %v824_v10, %v736_v59  ;;  %v1506_v59 = vpack.c.bf16 %v145_v57, %v144_v56  ;;  %v1514_v9 = vpack.c.bf16 %v149_v7, %v148_v6 }
 0x801   :  { %v828_v11 = vpop.permute.xlu0 %827 }
 0x802   :  { %v830_v14 = vmul.f32 %v828_v11, %v824_v10  ;;  %v133_v11 = vld [vmem:[%s2315_s3 + $0x48] sm:$0xff] }
 0x804   :  { %832 = vrot.lane.b32.xlu1 %v830_v14, %s1709_s7  ;;  %v150_v14 = vld [vmem:[%s2315_s3 + $0xd0] sm:$0xff] }
 0x876   :  { %v833_v16 = vpop.permute.xlu1 %832 }
 0x877   :  { %v835_v18 = vadd.f32 %v833_v16, %v825_v15  ;;  %v151_v15 = vld [vmem:[%s2315_s3 + $0xd8] sm:$0xff] }
 0x879   :  { %1691 = vtanh.f32 %v835_v18 }
 0x883   :  { %v1692_v19 = vpop.eup %1691 }
 0x884   :  { %838 = vrot.lane.b32.xlu0 %v1692_v19, %s1706_s20  ;;  %v134_v19 = vld [vmem:[%s2315_s3 + $0x50] sm:$0xff] }
 0x8f6   :  { %v839_v20 = vpop.permute.xlu0 %838 }
 0x8f7   :  { %v841_v21 = vmul.f32 %v839_v20, %v824_v10  ;;  %v132_v10 = vld [vmem:[%s2315_s3 + $0x40] sm:$0xff]  ;;  %v135_v20 = vld [vmem:[%s2315_s3 + $0x58] sm:$0xff] }
 0x8f8   :  { %v1516_v16 = vpack.c.bf16 %v133_v11, %v132_v10  ;;  %v1048_v11 = vld [vmem:[%s2323_s9] sm:$0xff] }
 0x8f9   :  { %843 = vrot.lane.b32.xlu1 %v841_v21, %s1709_s7  ;;  %v152_v21 = vld [vmem:[%s2315_s3 + $0xe0] sm:$0xff] }
 0x96b   :  { %v844_v22 = vpop.permute.xlu1 %843 }
 0x96c   :  { %1466 = vmatmul.mubr.msk.f32.vlgmr.msra.gmra.mrb[8].mxu1 %vm546_vm11, %v844_v22  ;;  %v153_v22 = vld [vmem:[%s2315_s3 + $0xe8] sm:$0xff] }
 0x96d   :  { %1588 = vmatpush3.bf16.msra.mxu1 %v1928_v12  ;;  %1476 = vmatprep.mubr.msk.f32.mxu1 %vm1707_vm6, %v1705_v54 }
 0x96e   :  { %1589 = vmatprep.subr.bf16.mxu1 %v1708_v13 }
 0x971   :  { %1591 = vmatpush3.bf16.msra.mxu1 %v1944_v17 }
 0xa3f   :  { %v913_v25 = vpop.f32.mrb[8].mxu1 }
 0xa40   :  { %v1637_v26 = vadd.f32 %v1982_v24, %v913_v25  ;;  %v1467_v27 = vpop.f32.mrb[9].mxu1  ;;  %v1520_v25 = vpack.c.bf16 %v135_v20, %v134_v19  ;;  %v1053_v19 = vld [vmem:[%s2323_s9 + $0x28] sm:$0xff] }
 0xa41   :  { %v136_v27 = vld [vmem:[%s2315_s3 + $0x60] sm:$0xff] }
 0xa42   :  { %v918_v29 = vmul.f32 0.5, %v1637_v26 }
 0xa44   :  { %v919_v30 = vsel %vm1987_vm10, %v918_v29, %v1637_v26  ;;  %v1522_v26 = vpack.c.bf16 %v153_v22, %v152_v21  ;;  %v137_v29 = vld [vmem:[%s2315_s3 + $0x68] sm:$0xff]  ;;  %v1054_v21 = vld [vmem:[%s2323_s9 + $0x30] sm:$0xff]  ;;  %v1055_v22 = vld [vmem:[%s2323_s9 + $0x38] sm:$0xff] }
 0xa45   :  { %1693 = vtanh.f32 %v919_v30  ;;  %v1524_v30 = vpack.c.bf16 %v137_v29, %v136_v27  ;;  %v1056_v27 = vld [vmem:[%s2323_s9 + $0x40] sm:$0xff]  ;;  %v1057_v29 = vld [vmem:[%s2323_s9 + $0x48] sm:$0xff] }
 0xa4f   :  { %v1694_v31 = vpop.eup %1693 }
 0xa50   :  { %v921_v32 = vmul.f32 0.5, %v1694_v31 }
 0xa52   :  { %v922_v33 = vadd.f32 0.5, %v921_v32  ;;  %v154_v32 = vld [vmem:[%s2315_s3 + $0xf0] sm:$0xff] }
 0xa54   :  { %v923_v12 = vsel %vm1987_vm10, %v922_v33, %v1694_v31  ;;  %v155_v33 = vld [vmem:[%s2315_s3 + $0xf8] sm:$0xff] }
 0xa55   :  { %926 = vrot.lane.b32.xlu0 %v923_v12, %s1706_s20  ;;  %v924_v17 = vmul.f32 %v923_v12, %v835_v18  ;;  %v1518_v18 = vpack.c.bf16 %v151_v15, %v150_v14  ;;  %v1050_v14 = vld [vmem:[%s2323_s9 + $0x10] sm:$0xff] }
 0xac7   :  { %v927_v34 = vpop.permute.xlu0 %926 }
 0xac8   :  { %v929_v35 = vmul.f32 %v927_v34, %v923_v12  ;;  %v138_v34 = vld [vmem:[%s2315_s3 + $0x70] sm:$0xff] }
 0xaca   :  { %931 = vrot.lane.b32.xlu1 %v929_v35, %s1709_s7  ;;  %v139_v35 = vld [vmem:[%s2315_s3 + $0x78] sm:$0xff] }
 0xb3c   :  { %v932_v36 = vpop.permute.xlu1 %931 }
 0xb3d   :  { %v2044_v37 = vadd.f32 %v932_v36, %v924_v17  ;;  %v1528_v17 = vpack.c.bf16 %v139_v35, %v138_v34  ;;  %v1061_v34 = vld [vmem:[%s2323_s9 + $0x68] sm:$0xff] }
 0xb3f   :  { %1695 = vtanh.f32 %v2044_v37 }
 0xb49   :  { %v1696_v40 = vpop.eup %1695 }
 0xb4a   :  { %937 = vrot.lane.b32.xlu0 %v1696_v40, %s1706_s20 }
 0xb4e   :  { %74 = vperm.xlu0 %1671, %v1798_v1  }
 0xb52   :  { %1674 = vset.pattern.permute.xlu0 %v1712_v41 }
 0xb53   :  { %56 = vperm.xlu0 %1674, %v1798_v1  }
 0xb57   :  { %1680 = vset.pattern.permute.xlu0 %v1701_v0  ;;  %v124_v0 = vld [vmem:[%s2315_s3] sm:$0xff] }
 0xb58   :  { %v1500_v51 = vpack.c.bf16 %v125_v48, %v124_v0 }
 0xb5a   :  { %1501 = vmatpush3.bf16.msra.mxu0 %v1500_v51 }
 0xb5b   :  { %1503 = vmatprep.subr.bf16.mxu0 %v1502_v52 }
 0xbbc   :  { %v938_v42 = vpop.permute.xlu0 %937 }
 0xbbd   :  { %v940_v43 = vmul.f32 %v938_v42, %v923_v12  ;;  %v1526_v12 = vpack.c.bf16 %v155_v33, %v154_v32  ;;  %v1059_v32 = vld [vmem:[%s2323_s9 + $0x58] sm:$0xff] }
 0xbbf   :  { %942 = vrot.lane.b32.xlu1 %v940_v43, %s1709_s7 }
 0xbc3   :  { %62 = vperm.xlu1 %1672, %v1798_v1  }
 0xbc7   :  { %1673 = vset.pattern.permute.xlu1 %v1713_v44 }
 0xbc8   :  { %68 = vperm.xlu1 %1673, %v1798_v1   ;;  %v127_v1 = vld [vmem:[%s2315_s3 + $0x18] sm:$0xff] }
 0xbc9   :  { %v1504_v58 = vpack.c.bf16 %v127_v1, %v126_v53 }
 0xbcb   :  { %1505 = vmatpush3.bf16.msra.mxu0 %v1504_v58 }
 0xbcc   :  { %1507 = vmatprep.subr.bf16.mxu0 %v1506_v59 }
 0xbcd   :  { %v75_v36 = vpop.permute.xlu0 %74 }
 0xbce   :  { %vm76_vm12 = vcmp.eq.s32.totalorder %v1901_v55, %v75_v36  ;;  %v1063_v36 = vld [vmem:[%s2323_s9 + $0x78] sm:$0xff] }
 0xbcf   :  { %1509 = vmatpush3.bf16.msra.mxu0 %v1508_v2  ;;  %v1265_v39 = vsel %vm76_vm12, 1.0, %v1705_v54 }
 0xbd0   :  { %1511 = vmatprep.subr.bf16.mxu0 %v1510_v3  ;;  %v1270_v3 = vld [vmem:[%s2322_s5] ss:$0 sm:$0xff] }
 0xbd2   :  { %v57_v43 = vpop.permute.xlu0 %56 }
 0xbd3   :  { %1513 = vmatpush3.bf16.msra.mxu0 %v1512_v8  ;;  %vm58_vm15 = vcmp.eq.s32.totalorder %v1901_v55, %v57_v43  ;;  %v1067_v43 = vld [vmem:[%s2323_s9 + $0x98] sm:$0xff] }
 0xbd4   :  { %1515 = vmatprep.subr.bf16.mxu0 %v1514_v9  ;;  %v1262_v46 = vsel %vm58_vm15, 1.0, %v1705_v54 }
 0xbd7   :  { %1517 = vmatpush3.bf16.msra.mxu0 %v1516_v16 }
 0xbd8   :  { %1519 = vmatprep.subr.bf16.mxu0 %v1518_v18  ;;  %v1052_v18 = vld [vmem:[%s2323_s9 + $0x20] sm:$0xff] }
 0xbd9   :  { %v1599_v20 = vpack.c.bf16 %v1053_v19, %v1052_v18 }
 0xbdb   :  { %1521 = vmatpush3.bf16.msra.mxu0 %v1520_v25 }
 0xbdc   :  { %1523 = vmatprep.subr.bf16.mxu0 %v1522_v26  ;;  %v1602_v26 = vpack.c.bf16 %v1055_v22, %v1054_v21 }
 0xbdf   :  { %1525 = vmatpush3.bf16.msra.mxu0 %v1524_v30  ;;  %v1605_v30 = vpack.c.bf16 %v1057_v29, %v1056_v27 }
 0xbe0   :  { %1527 = vmatprep.subr.bf16.mxu0 %v1526_v12  ;;  %v1060_v12 = vld [vmem:[%s2323_s9 + $0x60] sm:$0xff] }
 0xbe1   :  { %v1611_v35 = vpack.c.bf16 %v1061_v34, %v1060_v12 }
 0xbe3   :  { %1529 = vmatpush3.bf16.msra.mxu0 %v1528_v17  ;;  %v1062_v17 = vld [vmem:[%s2323_s9 + $0x70] sm:$0xff] }
 0xbe4   :  { %1402 = vmatprep.subr.mxu0 %v1705_v54 }
 0xc31   :  { %v943_v31 = vpop.permute.xlu1 %942 }
 0xc32   :  { %1477 = vmatmul.mubr.msk.f32.vlgmr.msra.gmra.mrb[10].mxu1 %vm546_vm11, %v943_v31  ;;  %v1058_v31 = vld [vmem:[%s2323_s9 + $0x50] sm:$0xff] }
 0xc33   :  { %v1608_v33 = vpack.c.bf16 %v1059_v32, %v1058_v31 }
 0xc42   :  { %v63_v38 = vpop.permute.xlu1 %62 }
 0xc43   :  { %vm64_vm13 = vcmp.eq.s32.totalorder %v1901_v55, %v63_v38  ;;  %v1614_v38 = vpack.c.bf16 %v1063_v36, %v1062_v17 }
 0xc44   :  { %v1263_v40 = vsel %vm64_vm13, 1.0, %v1705_v54 }
 0xc45   :  { %v1675_v41 = vpack.i.bf16 %v1263_v40, %v1265_v39  ;;  %v1064_v39 = vld [vmem:[%s2323_s9 + $0x80] sm:$0xff]  ;;  %v1065_v40 = vld [vmem:[%s2323_s9 + $0x88] sm:$0xff] }
 0xc47   :  { %1676 = vrot.lane.b32.xlu1 %v1675_v41, %s1706_s20  ;;  %v69_v42 = vpop.permute.xlu1 %68  ;;  %v1617_v41 = vpack.c.bf16 %v1065_v40, %v1064_v39 }
 0xc48   :  { %vm70_vm14 = vcmp.eq.s32.totalorder %v1901_v55, %v69_v42  ;;  %v328_v55 = vld [vmem:[%s2321_s1] sm:$0xff]  ;;  %v1066_v42 = vld [vmem:[%s2323_s9 + $0x90] sm:$0xff] }
 0xc49   :  { %v1264_v44 = vsel %vm70_vm14, 1.0, %v1705_v54 }
 0xcb9   :  { %v1677_v45 = vpop.permute.xlu1 %1676 }
 0xcba   :  { %v1679_v0 = vunpack.i.h.bf16 %v1677_v45  ;;  %v1678_v47 = vunpack.i.l.bf16 %v1677_v45 }
 0xcbc   :  { %v121_v48 = vsel %vm119_vm4, %v1264_v44, %v1678_v47  ;;  %v120_v49 = vsel %vm119_vm4, %v1262_v46, %v1679_v0  ;;  %v1620_v44 = vpack.c.bf16 %v1067_v43, %v1066_v42  ;;  %v1148_v0 = vld [vmem:[%s2324_s11] sm:$0xff]  ;;  %v1149_v47 = vld [vmem:[%s2324_s11 + $0x8] sm:$0xff] }
 0xcbd   :  { %252 = vmatprep.mubr.f32.mxu0 %v121_v48 }
 0xcbe   :  { %253 = vmatmul.mubr.f32.vlgmr.msra.gmra.mrb[0].mxu0 %v120_v49  ;;  %v1623_v49 = vpack.c.bf16 %v1149_v47, %v1148_v0 }
 0xcbf   :  { %1403 = vmatpush3.msk.msra.mxu0 %vm341_vm0, %v329_v50  ;;  %1404 = vmatprep.mubr.msk.f32.mxu0 %vm1707_vm6, %v1705_v54 }
 0xcc0   :  { %1592 = vmatprep.subr.bf16.mxu0 %v1708_v13 }
 0xcc2   :  { %1405 = vmatmul.mubr.msk.f32.vlgmr.msra.gmra.mrb[2].mxu0 %vm337_vm1, %v328_v55  ;;  %v1150_v55 = vld [vmem:[%s2324_s11 + $0x10] sm:$0xff] }
 0xd05   :  { %v1012_v51 = vpop.f32.mrb[10].mxu1 }
 0xd06   :  { %v1638_v52 = vadd.f32 %v1982_v24, %v1012_v51  ;;  %v1478_v53 = vpop.f32.mrb[11].mxu1  ;;  %v1151_v51 = vld [vmem:[%s2324_s11 + $0x18] sm:$0xff] }
 0xd07   :  { %v1626_v53 = vpack.c.bf16 %v1151_v51, %v1150_v55 }
 0xd08   :  { %v1017_v1 = vmul.f32 0.5, %v1638_v52 }
 0xd0a   :  { %v1018_v56 = vsel %vm1987_vm10, %v1017_v1, %v1638_v52  ;;  %v1152_v1 = vld [vmem:[%s2324_s11 + $0x20] sm:$0xff] }
 0xd0b   :  { %1697 = vtanh.f32 %v1018_v56  ;;  %v1153_v56 = vld [vmem:[%s2324_s11 + $0x28] sm:$0xff] }
 0xd15   :  { %v1698_v57 = vpop.eup %1697 }
 0xd16   :  { %v1020_v58 = vmul.f32 0.5, %v1698_v57 }
 0xd18   :  { %v1021_v59 = vadd.f32 0.5, %v1020_v58  ;;  %v1155_v58 = vld [vmem:[%s2324_s11 + $0x38] sm:$0xff] }
 0xd1a   :  { %v2177_v60 = vsel %vm1987_vm10, %v1021_v59, %v1698_v57  ;;  %v1629_v57 = vpack.c.bf16 %v1153_v56, %v1152_v1 }
 0xd1b   :  { %1025 = vrot.lane.b32.xlu1 %v2177_v60, %s1706_s20  ;;  %v1023_v8 = vmul.f32 %v2177_v60, %v2044_v37  ;;  %v1051_v37 = vld [vmem:[%s2323_s9 + $0x18] sm:$0xff] }
 0xd1c   :  { %v1596_v16 = vpack.c.bf16 %v1051_v37, %v1050_v14 }
 0xd8d   :  { %v1026_v61 = vpop.permute.xlu1 %1025 }
 0xd8e   :  { %v1028_v62 = vmul.f32 %v1026_v61, %v2177_v60 }
 0xd90   :  { %1030 = vrot.lane.b32.xlu0 %v1028_v62, %s1709_s7 }
 0xd91   :  { %v1322_v24 = vpop.f32.mrb[0].mxu0 }
 0xd92   :  { %v1323_v63 = vpop.f32.mrb[1].mxu0 }
 0xd93   :  { %v1324_v2 = vadd.f32 %v1323_v63, %v1322_v24 }
 0xd95   :  { %v2187_v4 = vadd.f32 %v1977_v23, %v1324_v2  ;;  %v411_v28 = vpop.f32.mrb[2].mxu0  ;;  %v1049_v23 = vld [vmem:[%s2323_s9 + $0x8] sm:$0xff]  ;;  %v1286_v2 = vld [vmem:[%s2327_s12] ss:$0 sm:$0xff] }
 0xd96   :  { %v412_v5 = vadd.f32 %v1270_v3, %v411_v28  ;;  %v1406_v6 = vpop.f32.mrb[3].mxu0  ;;  %v1593_v15 = vpack.c.bf16 %v1049_v23, %v1048_v11 }
 0xd98   :  { %v415_v7 = vmax.f32 %v412_v5, 0.0  ;;  %1594 = vmatpush1.bf16.msra.mxu0 %v1593_v15  ;;  %v1288_v5 = vld [vmem:[%s2328_s13] ss:$0 sm:$0xff] }
 0xd99   :  { %1595 = vmatprep.subr.bf16.mxu0 %v1708_v13 }
 0xd9a   :  { %1041 = vrot.lane.b32.xlu0 %v415_v7, %s1706_s20 }
 0xd9c   :  { %1597 = vmatpush1.bf16.msra.mxu0 %v1596_v16 }
 0xd9d   :  { %1598 = vmatprep.subr.bf16.mxu0 %v1708_v13 }
 0xda0   :  { %1600 = vmatpush1.bf16.msra.mxu0 %v1599_v20 }
 0xda1   :  { %1601 = vmatprep.subr.bf16.mxu0 %v1708_v13 }
 0xda4   :  { %1603 = vmatpush1.bf16.msra.mxu0 %v1602_v26 }
 0xda5   :  { %1604 = vmatprep.subr.bf16.mxu0 %v1708_v13 }
 0xda8   :  { %1606 = vmatpush1.bf16.msra.mxu0 %v1605_v30 }
 0xda9   :  { %1607 = vmatprep.subr.bf16.mxu0 %v1708_v13 }
 0xdac   :  { %1609 = vmatpush1.bf16.msra.mxu0 %v1608_v33 }
 0xdad   :  { %1610 = vmatprep.subr.bf16.mxu0 %v1708_v13 }
 0xdb0   :  { %1612 = vmatpush1.bf16.msra.mxu0 %v1611_v35 }
 0xdb1   :  { %1613 = vmatprep.subr.bf16.mxu0 %v1708_v13 }
 0xdb4   :  { %1615 = vmatpush1.bf16.msra.mxu0 %v1614_v38 }
 0xdb5   :  { %1616 = vmatprep.subr.bf16.mxu0 %v1708_v13 }
 0xdb8   :  { %1618 = vmatpush1.bf16.msra.mxu0 %v1617_v41 }
 0xdb9   :  { %1619 = vmatprep.subr.bf16.mxu0 %v1708_v13 }
 0xdbc   :  { %1621 = vmatpush1.bf16.msra.mxu0 %v1620_v44 }
 0xdbd   :  { %1622 = vmatprep.subr.bf16.mxu0 %v1708_v13 }
 0xe02   :  { %v1031_v9 = vpop.permute.xlu0 %1030 }
 0xe03   :  { %v1033_v10 = vadd.f32 %v1031_v9, %v1023_v8 }
 0xe05   :  { %1699 = vtanh.f32 %v1033_v10 }
 0xe0c   :  { %v1042_v48 = vpop.permute.xlu0 %1041 }
 0xe0d   :  { %v1047_v52 = vsel %vm119_vm4, %v2187_v4, %v1042_v48 }
 0xe0f   :  { %v1700_v25 = vpop.eup %1699 }
 0xe10   :  { %1036 = vrot.lane.b32.xlu1 %v1700_v25, %s1706_s20 }
 0xe82   :  { %v1037_v45 = vpop.permute.xlu1 %1036 }
 0xe83   :  { %v1039_v46 = vmul.f32 %v1037_v45, %v2177_v60  ;;  %v1284_v60 = vld [vmem:[%s2325_s10] ss:$0 sm:$0xff] }
 0xe85   :  { %1045 = vrot.lane.b32.xlu1 %v1039_v46, %s1709_s7 }
 0xef7   :  { %v1046_v50 = vpop.permute.xlu1 %1045 }
 0xef8   :  { %1285 = vmatprep.mubr.msk.f32.mxu0 %vm546_vm11, %v1046_v50 }
 0xef9   :  { %1142 = vmatmul.mubr.f32.vlgmr.msra.gmra.mrb[4].mxu0 %v1047_v52 }
 0xefa   :  { %1624 = vmatpush3.bf16.msra.mxu0 %v1623_v49  ;;  %1495 = vmatprep.mubr.msk.f32.mxu0 %vm1707_vm6, %v1705_v54  ;;  %v1154_v54 = vld [vmem:[%s2324_s11 + $0x30] sm:$0xff] }
 0xefb   :  { %1625 = vmatprep.subr.bf16.mxu0 %v1708_v13  ;;  %v1632_v59 = vpack.c.bf16 %v1155_v58, %v1154_v54 }
 0xefe   :  { %1627 = vmatpush3.bf16.msra.mxu0 %v1626_v53 }
 0xeff   :  { %1628 = vmatprep.subr.bf16.mxu0 %v1708_v13 }
 0xf02   :  { %1630 = vmatpush3.bf16.msra.mxu0 %v1629_v57 }
 0xf03   :  { %1631 = vmatprep.subr.bf16.mxu0 %v1708_v13  ;;  %v20_v13 = vstv %s2326_s14 }
 0xf04   :  { %21 = vst [vmem:[#allocation2] sm:$0x1] %v20_v13 }
 0xf06   :  { %1633 = vmatpush3.bf16.msra.mxu0 %v1632_v59 }
 0xf0b   :  { %v1289_v9 = vld [vmem:[#allocation2] ss:$0 sm:$0xff] }
 0xfcc   :  { %v1143_v61 = vpop.f32.mrb[4].mxu0 }
 0xfcd   :  { %v1144_v62 = vadd.f32 %v1284_v60, %v1143_v61  ;;  %v1145_v24 = vpop.f32.mrb[5].mxu0 }
 0xfcf   :  { %v1147_v63 = vmax.f32 %v1144_v62, 0.0 }
 0xfd1   :  { %1496 = vmatmul.mubr.msk.f32.vlgmr.msra.gmra.mrb[6].mxu0 %vm119_vm4, %v1147_v63 }
0x10a4   :  { %v1232_v3 = vpop.f32.mrb[6].mxu0 }
0x10a5   :  { %v1233_v4 = vadd.f32 %v1286_v2, %v1232_v3  ;;  %v1497_v28 = vpop.f32.mrb[7].mxu0 }
0x10a7   :  { %v1236_v6 = vmax.f32 %v1233_v4, 0.0 }
0x10a9   :  { %v1244_v7 = vmul.f32 %v1288_v5, %v1236_v6 }
0x10ab   :  { %v1245_v8 = vsel %vm119_vm4, %v1244_v7, 0.0 }
0x10ac   :  { %1246 = vadd.xlane.f32.xlu0 %v1245_v8 }
0x1139   :  { %v1247_v10 = vpop.xlane.xlu0 %1246 }
0x113a   :  { %v1255_v11 = vadd.f32 %v1289_v9, %v1247_v10 }
0x113c   :  { %1257 = vst.msk [vmem:[%s2329_s15] sm:$0xff] %vm1256_vm2, %v1255_v11 }

</bundles_post_ra>
